<compile_context>
chip_gen: v6e
topology: v6e:2x2x1
jax: 0.10.0
libtpu: 0.0.40
codegen_flags: <defaults>
</compile_context>

<pallas_src>
import jax
import jax.numpy as jnp
from jax.experimental import pallas as pl
from jax.experimental.pallas import tpu as pltpu

hidden_size = 64
input_size = 12
num_layers = 4
num_classes = 10

MAX_TILE_B = 8192  # lane / MXU-N dim cap; multiple of 256 (v6e/v7x) and 128


def fnn_kernel(x_ref, w1_ref, b1_ref, w2_ref, b2_ref, w3_ref, b3_ref, o_ref):
    # x_ref : (TILE_B, input_size)   bf16  (untransposed input tile)
    # w1_ref: (hidden, input_size)   bf16   b1_ref: (hidden, 1)      f32
    # w2_ref: (hidden, hidden)       bf16   b2_ref: (hidden, 1)      f32
    # w3_ref: (num_classes, hidden)  bf16   b3_ref: (num_classes, 1) f32
    # o_ref : (num_classes, TILE_B)  f32    (batch on lanes -> dense store)
    tile_b = x_ref.shape[0]

    # Hoist all loads (and the shared hidden-bias broadcast) out of the
    # unrolled layer loop.
    x = x_ref[...]
    w1 = w1_ref[...]
    w2 = w2_ref[...]
    w3 = w3_ref[...]
    b1 = b1_ref[...]
    b3 = b3_ref[...]
    b2b = jnp.broadcast_to(b2_ref[...], (hidden_size, tile_b))

    # l1 + relu: contract input_size on both operands -> (hidden, TILE_B).
    # No transpose of x anywhere (on-chip or wrapper-side).
    h = jax.lax.dot_general(
        w1, x, dimension_numbers=(((1,), (1,)), ((), ())),
        preferred_element_type=jnp.float32) + b1
    h = jnp.maximum(h, 0.0).astype(jnp.bfloat16)

    # num_layers x (l2 + relu + dropout[eval => identity]); w2/b2 are shared
    # across iterations, exactly as in the PyTorch module.
    for _ in range(num_layers):
        acc = jnp.dot(w2, h, preferred_element_type=jnp.float32) + b2b
        h = jnp.maximum(acc, 0.0).astype(jnp.bfloat16)

    # l3 (logits, no activation) — lane-dense (num_classes, TILE_B) store.
    o_ref[...] = (jnp.dot(w3, h, preferred_element_type=jnp.float32)
                  + b3).astype(o_ref.dtype)


def _round_up(x, m):
    return ((x + m - 1) // m) * m


def _pick_tile_b(batch):
    """Right-size the batch tile: multiple of 256, capped at MAX_TILE_B, and
    (for large batches) at most ~half the batch so v7x's two TensorCores both
    receive grid steps."""
    half = max(1, -(-batch // 2))          # cdiv(batch, 2)
    t = _round_up(half, 256)
    return max(256, min(MAX_TILE_B, t))


def fnn_forward(x, params):
    """x: (B, input_size) float32 -> (B, num_classes) float32 logits."""
    w1, b1, w2, b2, w3, b3 = params
    B = x.shape[0]
    tile_b = _pick_tile_b(B)
    n_tiles = pl.cdiv(B, tile_b)
    Bp = n_tiles * tile_b

    # bf16 input, padded to a multiple of tile_b with a single fused pad.
    xt = jnp.pad(x.astype(jnp.bfloat16), ((0, Bp - B), (0, 0)))
    w1 = w1.astype(jnp.bfloat16)
    w2 = w2.astype(jnp.bfloat16)
    w3 = w3.astype(jnp.bfloat16)

    full = lambda a: pl.BlockSpec(a.shape, lambda i: (0,) * a.ndim)

    out_t = pl.pallas_call(
        fnn_kernel,
        out_shape=jax.ShapeDtypeStruct((num_classes, Bp), jnp.float32),
        grid=(n_tiles,),
        in_specs=[
            pl.BlockSpec((tile_b, input_size), lambda i: (i, 0)),  # x tile
            full(w1), full(b1),
            full(w2), full(b2),
            full(w3), full(b3),
        ],
        out_specs=pl.BlockSpec((num_classes, tile_b), lambda i: (0, i)),
        compiler_params=pltpu.CompilerParams(
            dimension_semantics=("parallel",),
            vmem_limit_bytes=32 * 1024 * 1024),
    )(xt, w1, b1, w2, b2, w3, b3)

    # Consumers that accept (num_classes, B) logits (or a fused argmax/softmax)
    # could skip this final small transpose.
    return out_t[:, :B].T


def init_params(key):
    """Deterministic init (uniform, PyTorch-Linear-style bounds).

    Weights in PyTorch orientation (out_features, in_features); biases as
    (out_features, 1) so they broadcast over the batch (lane) axis in-kernel.
    """
    ks = jax.random.split(key, 6)

    def linear(kw, kb, fan_in, fan_out):
        bound = 1.0 / jnp.sqrt(jnp.float32(fan_in))
        w = jax.random.uniform(kw, (fan_out, fan_in), jnp.float32, -bound, bound)
        b = jax.random.uniform(kb, (fan_out, 1), jnp.float32, -bound, bound)
        return w, b

    w1, b1 = linear(ks[0], ks[1], input_size, hidden_size)
    w2, b2 = linear(ks[2], ks[3], hidden_size, hidden_size)
    w3, b3 = linear(ks[4], ks[5], hidden_size, num_classes)
    return (w1, b1, w2, b2, w3, b3)


def fnn_reference(x, params):
    """Pure-JAX reference with matched numerics (bf16 weights/activations,
    f32 accumulate, f32 bias+ReLU, eval-mode dropout)."""
    w1, b1, w2, b2, w3, b3 = params
    bf = jnp.bfloat16
    h = jnp.dot(x.astype(bf), w1.T.astype(bf),
                preferred_element_type=jnp.float32) + b1.T
    h = jnp.maximum(h, 0.0).astype(bf)
    for _ in range(num_layers):
        h = jnp.dot(h, w2.T.astype(bf),
                    preferred_element_type=jnp.float32) + b2.T
        h = jnp.maximum(h, 0.0).astype(bf)
    return jnp.dot(h, w3.T.astype(bf),
                   preferred_element_type=jnp.float32) + b3.T


if __name__ == "__main__":
    key = jax.random.PRNGKey(0)
    k_x, k_p = jax.random.split(key)

    batch = 8
    x = jax.random.normal(k_x, (batch, input_size), jnp.float32)
    params = init_params(k_p)

    out = jax.block_until_ready(fnn_forward(x, params))
    ref = fnn_reference(x, params)

    assert out.shape == (batch, num_classes)
    err = float(jnp.max(jnp.abs(out - ref)))
    assert jnp.allclose(out, ref, atol=1e-3, rtol=1e-3), err

    print("KERNEL_OK")
</pallas_src>

<mosaic_0001>
module attributes {stable_mosaic.version = 11 : i64} {
  func.func @fnn_kernel(%arg0: i32, %arg1: memref<256x12xbf16, #tpu.memory_space<vmem>>, %arg2: memref<64x12xbf16, #tpu.memory_space<vmem>>, %arg3: memref<64x1xf32, #tpu.memory_space<vmem>>, %arg4: memref<64x64xbf16, #tpu.memory_space<vmem>>, %arg5: memref<64x1xf32, #tpu.memory_space<vmem>>, %arg6: memref<10x64xbf16, #tpu.memory_space<vmem>>, %arg7: memref<10x1xf32, #tpu.memory_space<vmem>>, %arg8: memref<10x256xf32, #tpu.memory_space<vmem>>) attributes {dimension_semantics = [#tpu.dimension_semantics<parallel>], iteration_bounds = array<i64: 1>, scalar_prefetch = 0 : i64, scratch_operands = 0 : i64, tpu.core_type = #tpu.core_type<tc>, window_params = [{transform_indices = @transform_0, window_bounds = array<i64: 256, 12>}, {pipeline_mode = #tpu.pipeline_mode<synchronous>, transform_indices = @transform_1, window_bounds = array<i64: 64, 12>}, {pipeline_mode = #tpu.pipeline_mode<synchronous>, transform_indices = @transform_2, window_bounds = array<i64: 64, 1>}, {pipeline_mode = #tpu.pipeline_mode<synchronous>, transform_indices = @transform_3, window_bounds = array<i64: 64, 64>}, {pipeline_mode = #tpu.pipeline_mode<synchronous>, transform_indices = @transform_4, window_bounds = array<i64: 64, 1>}, {pipeline_mode = #tpu.pipeline_mode<synchronous>, transform_indices = @transform_5, window_bounds = array<i64: 10, 64>}, {pipeline_mode = #tpu.pipeline_mode<synchronous>, transform_indices = @transform_6, window_bounds = array<i64: 10, 1>}, {transform_indices = @transform_7, window_bounds = array<i64: 10, 256>}]} {
    %c0 = arith.constant 0 : index
    %c0_0 = arith.constant 0 : index
    %0 = vector.load %arg1[%c0, %c0_0] : memref<256x12xbf16, #tpu.memory_space<vmem>>, vector<256x12xbf16>
    %c0_1 = arith.constant 0 : index
    %c0_2 = arith.constant 0 : index
    %1 = vector.load %arg2[%c0_1, %c0_2] : memref<64x12xbf16, #tpu.memory_space<vmem>>, vector<64x12xbf16>
    %c0_3 = arith.constant 0 : index
    %c0_4 = arith.constant 0 : index
    %2 = vector.load %arg4[%c0_3, %c0_4] : memref<64x64xbf16, #tpu.memory_space<vmem>>, vector<64x64xbf16>
    %c0_5 = arith.constant 0 : index
    %c0_6 = arith.constant 0 : index
    %3 = vector.load %arg6[%c0_5, %c0_6] : memref<10x64xbf16, #tpu.memory_space<vmem>>, vector<10x64xbf16>
    %c0_7 = arith.constant 0 : index
    %c0_8 = arith.constant 0 : index
    %4 = vector.load %arg3[%c0_7, %c0_8] : memref<64x1xf32, #tpu.memory_space<vmem>>, vector<64x1xf32>
    %c0_9 = arith.constant 0 : index
    %c0_10 = arith.constant 0 : index
    %5 = vector.load %arg7[%c0_9, %c0_10] : memref<10x1xf32, #tpu.memory_space<vmem>>, vector<10x1xf32>
    %c0_11 = arith.constant 0 : index
    %c0_12 = arith.constant 0 : index
    %6 = vector.load %arg5[%c0_11, %c0_12] : memref<64x1xf32, #tpu.memory_space<vmem>>, vector<64x1xf32>
    %7 = vector.shape_cast %6 : vector<64x1xf32> to vector<64x1xf32>
    %8 = vector.broadcast %7 : vector<64x1xf32> to vector<64x256xf32>
    %cst = arith.constant dense<0.000000e+00> : vector<64x256xf32>
    %9 = tpu.matmul %1, %0, %cst {dimension_numbers = #tpu.dot_dimension_numbers<[1], [1], [0], [0], [0, 0, 1, 0], [], []>} : vector<64x12xbf16>, vector<256x12xbf16>, vector<64x256xf32> -> vector<64x256xf32>
    %10 = vector.broadcast %4 : vector<64x1xf32> to vector<64x256xf32>
    %11 = arith.addf %9, %10 : vector<64x256xf32>
    %cst_13 = arith.constant 0.000000e+00 : f32
    %12 = vector.broadcast %cst_13 : f32 to vector<64x256xf32>
    %13 = arith.maximumf %11, %12 : vector<64x256xf32>
    %14 = arith.truncf %13 : vector<64x256xf32> to vector<64x256xbf16>
    %cst_14 = arith.constant dense<0.000000e+00> : vector<64x256xf32>
    %15 = tpu.matmul %2, %14, %cst_14 {dimension_numbers = #tpu.dot_dimension_numbers<[1], [0], [0], [1], [0, 0, 1, 1], [], []>} : vector<64x64xbf16>, vector<64x256xbf16>, vector<64x256xf32> -> vector<64x256xf32>
    %16 = arith.addf %15, %8 : vector<64x256xf32>
    %cst_15 = arith.constant 0.000000e+00 : f32
    %17 = vector.broadcast %cst_15 : f32 to vector<64x256xf32>
    %18 = arith.maximumf %16, %17 : vector<64x256xf32>
    %19 = arith.truncf %18 : vector<64x256xf32> to vector<64x256xbf16>
    %cst_16 = arith.constant dense<0.000000e+00> : vector<64x256xf32>
    %20 = tpu.matmul %2, %19, %cst_16 {dimension_numbers = #tpu.dot_dimension_numbers<[1], [0], [0], [1], [0, 0, 1, 1], [], []>} : vector<64x64xbf16>, vector<64x256xbf16>, vector<64x256xf32> -> vector<64x256xf32>
    %21 = arith.addf %20, %8 : vector<64x256xf32>
    %cst_17 = arith.constant 0.000000e+00 : f32
    %22 = vector.broadcast %cst_17 : f32 to vector<64x256xf32>
    %23 = arith.maximumf %21, %22 : vector<64x256xf32>
    %24 = arith.truncf %23 : vector<64x256xf32> to vector<64x256xbf16>
    %cst_18 = arith.constant dense<0.000000e+00> : vector<64x256xf32>
    %25 = tpu.matmul %2, %24, %cst_18 {dimension_numbers = #tpu.dot_dimension_numbers<[1], [0], [0], [1], [0, 0, 1, 1], [], []>} : vector<64x64xbf16>, vector<64x256xbf16>, vector<64x256xf32> -> vector<64x256xf32>
    %26 = arith.addf %25, %8 : vector<64x256xf32>
    %cst_19 = arith.constant 0.000000e+00 : f32
    %27 = vector.broadcast %cst_19 : f32 to vector<64x256xf32>
    %28 = arith.maximumf %26, %27 : vector<64x256xf32>
    %29 = arith.truncf %28 : vector<64x256xf32> to vector<64x256xbf16>
    %cst_20 = arith.constant dense<0.000000e+00> : vector<64x256xf32>
    %30 = tpu.matmul %2, %29, %cst_20 {dimension_numbers = #tpu.dot_dimension_numbers<[1], [0], [0], [1], [0, 0, 1, 1], [], []>} : vector<64x64xbf16>, vector<64x256xbf16>, vector<64x256xf32> -> vector<64x256xf32>
    %31 = arith.addf %30, %8 : vector<64x256xf32>
    %cst_21 = arith.constant 0.000000e+00 : f32
    %32 = vector.broadcast %cst_21 : f32 to vector<64x256xf32>
    %33 = arith.maximumf %31, %32 : vector<64x256xf32>
    %34 = arith.truncf %33 : vector<64x256xf32> to vector<64x256xbf16>
    %cst_22 = arith.constant dense<0.000000e+00> : vector<10x256xf32>
    %35 = tpu.matmul %3, %34, %cst_22 {dimension_numbers = #tpu.dot_dimension_numbers<[1], [0], [0], [1], [0, 0, 1, 1], [], []>} : vector<10x64xbf16>, vector<64x256xbf16>, vector<10x256xf32> -> vector<10x256xf32>
    %36 = vector.broadcast %5 : vector<10x1xf32> to vector<10x256xf32>
    %37 = arith.addf %35, %36 : vector<10x256xf32>
    %c0_23 = arith.constant 0 : index
    %c0_24 = arith.constant 0 : index
    %38 = vector.load %arg8[%c0_23, %c0_24] : memref<10x256xf32, #tpu.memory_space<vmem>>, vector<10x256xf32>
    tpu.vector_store %arg8[%c0_23, %c0_24], %37 {strides = array<i32>} : memref<10x256xf32, #tpu.memory_space<vmem>>, vector<10x256xf32>,
    return
  }
  func.func @transform_0(%arg0: i32) -> (i32, i32) {
    %c0_i32 = arith.constant 0 : i32
    %c0_i32_0 = arith.constant 0 : i32
    return %arg0, %c0_i32 : i32, i32
  }
  func.func @transform_1(%arg0: i32) -> (i32, i32) {
    %c0_i32 = arith.constant 0 : i32
    %c0_i32_0 = arith.constant 0 : i32
    %c0_i32_1 = arith.constant 0 : i32
    return %c0_i32, %c0_i32_0 : i32, i32
  }
  func.func @transform_2(%arg0: i32) -> (i32, i32) {
    %c0_i32 = arith.constant 0 : i32
    %c0_i32_0 = arith.constant 0 : i32
    %c0_i32_1 = arith.constant 0 : i32
    return %c0_i32, %c0_i32_0 : i32, i32
  }
  func.func @transform_3(%arg0: i32) -> (i32, i32) {
    %c0_i32 = arith.constant 0 : i32
    %c0_i32_0 = arith.constant 0 : i32
    %c0_i32_1 = arith.constant 0 : i32
    return %c0_i32, %c0_i32_0 : i32, i32
  }
  func.func @transform_4(%arg0: i32) -> (i32, i32) {
    %c0_i32 = arith.constant 0 : i32
    %c0_i32_0 = arith.constant 0 : i32
    %c0_i32_1 = arith.constant 0 : i32
    return %c0_i32, %c0_i32_0 : i32, i32
  }
  func.func @transform_5(%arg0: i32) -> (i32, i32) {
    %c0_i32 = arith.constant 0 : i32
    %c0_i32_0 = arith.constant 0 : i32
    %c0_i32_1 = arith.constant 0 : i32
    return %c0_i32, %c0_i32_0 : i32, i32
  }
  func.func @transform_6(%arg0: i32) -> (i32, i32) {
    %c0_i32 = arith.constant 0 : i32
    %c0_i32_0 = arith.constant 0 : i32
    %c0_i32_1 = arith.constant 0 : i32
    return %c0_i32, %c0_i32_0 : i32, i32
  }
  func.func @transform_7(%arg0: i32) -> (i32, i32) {
    %c0_i32 = arith.constant 0 : i32
    %c0_i32_0 = arith.constant 0 : i32
    return %c0_i32, %arg0 : i32, i32
  }
}

</mosaic_0001>

<bundles_post_ra>
// kernel: tpu_custom_call.1
= control target key start
LH: loop header
LB: loop body
LE: loop exit
PB: predicated region body
PF: predicated region fallthrough
CT: control target
= control target key end

     0   :  { %vm276_vm0 = vcmask 97280   ;;  %v1067_v3 = vmov 0   ;;  %s1411_s0 = inlined_call_operand.vmem [shape: bf16[256,12], index: 0, kind: input, shape index: {}]   ;;  %s1412_s1 = inlined_call_operand.vmem [shape: bf16[64,12], index: 1, kind: input, shape index: {}]   ;;  %s1413_s2 = inlined_call_operand.vmem [shape: f32[64,1], index: 2, kind: input, shape index: {}]   ;;  %s1414_s3 = inlined_call_operand.vmem [shape: bf16[64,64], index: 3, kind: input, shape index: {}]   ;;  %s1415_s4 = inlined_call_operand.vmem [shape: f32[64,1], index: 4, kind: input, shape index: {}]   ;;  %s1416_s5 = inlined_call_operand.vmem [shape: bf16[10,64], index: 5, kind: input, shape index: {}]   ;;  %s1417_s6 = inlined_call_operand.vmem [shape: f32[10,1], index: 6, kind: input, shape index: {}]   ;;  %s1418_s7 = inlined_call_operand.hbm [shape: f32[10,256], index: 7, kind: output, shape index: {}]  }
   0x1   :  { %v1020_v0 = vld [vmem:[%s1411_s0 + $0x78] sm:$0xff]   ;;  %v1022_v2 = vld [vmem:[%s1411_s0 + $0x70] sm:$0xff]   ;;  %1018 = vset.pattern.permute.xlu0 %v1067_v3  ;;  %1019 = vset.pattern.permute.xlu1 %v1067_v3  ;;  %v1024_v7 = vld [vmem:[%s1411_s0 + $0x68] sm:$0xff]  }
   0x2   :  { %v1021_v1 = vld [vmem:[%s1411_s0 + $0x38] sm:$0xff]   ;;  %1006 = vmatprep.subr.msk.bf16.mxu0 %vm276_vm0, %v1020_v0  ;;  %499 = vmatprep.mubr.bf16.mxu1 %v1067_v3  ;;  %v1023_v5 = vld [vmem:[%s1411_s0 + $0x30] sm:$0xff]   ;;  %v1025_v8 = vld [vmem:[%s1411_s0 + $0x28] sm:$0xff]  }
   0x3   :  { %v311_v4 = vsel %vm276_vm0, %v1021_v1, 0  ;;  %v308_v6 = vsel %vm276_vm0, %v1023_v5, 0  ;;  %v1140_v9 = vld [vmem:[%s1412_s1] sm:$0xff]   ;;  %v305_v10 = vsel %vm276_vm0, %v1025_v8, 0  ;;  %v84_v12 = vld [vmem:[%s1413_s2 + $0x30] sm:$0xff]  ;;  %v85_v15 = vld [vmem:[%s1413_s2 + $0x38] sm:$0xff] }
   0x4   :  { %983 = vmatpush3.bf16.xpose.msra.mxu0 %v311_v4  ;;  %v1026_v11 = vld [vmem:[%s1411_s0 + $0x60] sm:$0xff]   ;;  %998 = vmatprep.mubr.msk.bf16.mxu0 %vm276_vm0, %v1140_v9  ;;  %v83_v16 = vld [vmem:[%s1413_s2 + $0x28] sm:$0xff]  ;;  %v1028_v18 = vld [vmem:[%s1411_s0 + $0x58] sm:$0xff]  }
   0x5   :  { %1007 = vmatprep.subr.msk.bf16.mxu0 %vm276_vm0, %v1022_v2  ;;  %v82_v13 = vld [vmem:[%s1413_s2 + $0x20] sm:$0xff]  ;;  %168 = vperm.xlu0 %1018, %v84_v12   ;;  %v80_v19 = vld [vmem:[%s1413_s2 + $0x10] sm:$0xff]  ;;  %v81_v20 = vld [vmem:[%s1413_s2 + $0x18] sm:$0xff] }
   0x6   :  { %v1027_v14 = vld [vmem:[%s1411_s0 + $0x20] sm:$0xff]   ;;  %158 = vperm.xlu1 %1019, %v82_v13   ;;  %v1029_v21 = vld [vmem:[%s1411_s0 + $0x18] sm:$0xff]  }
   0x7   :  { %v302_v17 = vsel %vm276_vm0, %v1027_v14, 0 }
   0x9   :  { %173 = vperm.xlu0 %1018, %v85_v15  }
   0xa   :  { %163 = vperm.xlu1 %1019, %v83_v16  }
   0xc   :  { %985 = vmatpush3.bf16.xpose.msra.mxu0 %v308_v6 }
   0xd   :  { %1008 = vmatprep.subr.msk.bf16.mxu0 %vm276_vm0, %v1024_v7  ;;  %148 = vperm.xlu0 %1018, %v80_v19  }
  0x14   :  { %987 = vmatpush3.bf16.xpose.msra.mxu0 %v305_v10 }
  0x15   :  { %1009 = vmatprep.subr.msk.bf16.mxu0 %vm276_vm0, %v1026_v11 }
  0x1c   :  { %989 = vmatpush3.bf16.xpose.msra.mxu0 %v302_v17 }
  0x1d   :  { %1010 = vmatprep.subr.msk.bf16.mxu0 %vm276_vm0, %v1028_v18 }
  0x1e   :  { %12 = vsyncpa [#allocation3], 0  ;;  %153 = vperm.xlu1 %1019, %v81_v20   ;;  %v78_v22 = vld [vmem:[%s1413_s2] sm:$0xff]  ;;  %v79_v23 = vld [vmem:[%s1413_s2 + $0x8] sm:$0xff]  ;;  %v299_v24 = vsel %vm276_vm0, %v1029_v21, 0  ;;  %vm454_vm1 = vcmask 523264  }
  0x1f   :  { %v1030_v25 = vld [vmem:[%s1411_s0 + $0x50] sm:$0xff]   ;;  %138 = vperm.xlu0 %1018, %v78_v22   ;;  %v95_v27 = vld [vmem:[%s1415_s4 + $0x38] sm:$0xff]  ;;  %v92_v29 = vld [vmem:[%s1415_s4 + $0x20] sm:$0xff]  ;;  %s1068_s11 = smov [#allocation2]  }
  0x20   :  { %v94_v26 = vld [vmem:[%s1415_s4 + $0x30] sm:$0xff]  ;;  %v93_v30 = vld [vmem:[%s1415_s4 + $0x28] sm:$0xff]  ;;  %v91_v34 = vld [vmem:[%s1415_s4 + $0x18] sm:$0xff]  ;;  %s925_s12 = sshll.u32 %s1068_s11, 4  ;;  %s926_s12 = int_to_ptr.vmem [resolvable:$true] %s925_s12 }
  0x21   :  { %v1031_v28 = vld [vmem:[%s1411_s0 + $0x10] sm:$0xff]   ;;  %v1032_v32 = vld [vmem:[%s1411_s0 + $0x48] sm:$0xff]   ;;  %v88_v36 = vld [vmem:[%s1415_s4] sm:$0xff]  ;;  %p1050_p1 = scmp.lt.s32.totalorder %s926_s12, %s926_s12 }
  0x22   :  { %143 = vperm.xlu1 %1019, %v79_v23   ;;  %v296_v31 = vsel %vm276_vm0, %v1031_v28, 0  ;;  %v90_v33 = vld [vmem:[%s1415_s4 + $0x10] sm:$0xff]  ;;  %v1033_v35 = vld [vmem:[%s1411_s0 + $0x8] sm:$0xff]   ;;  %v1034_v39 = vld [vmem:[%s1411_s0 + $0x40] sm:$0xff]  }
  0x23   :  { %128 = vperm.xlu0 %1018, %v94_v26   ;;  %v89_v37 = vld [vmem:[%s1415_s4 + $0x8] sm:$0xff]  ;;  %v293_v38 = vsel %vm276_vm0, %v1033_v35, 0  ;;  %v86_v40 = vld [vmem:[%s1417_s6] sm:$0xff]  ;;  %v1038_v45 = vld [vmem:[%s1412_s1 + $0x10] sm:$0xff]  }
  0x24   :  { %991 = vmatpush3.bf16.xpose.msra.mxu0 %v299_v24  ;;  %v87_v41 = vld [vmem:[%s1417_s6 + $0x8] sm:$0x3]  ;;  %v1035_v42 = vld [vmem:[%s1411_s0] sm:$0xff]   ;;  %v1039_v46 = vld [vmem:[%s1412_s1 + $0x18] sm:$0xff]  }
  0x25   :  { %1011 = vmatprep.subr.msk.bf16.mxu0 %vm276_vm0, %v1030_v25  ;;  %v290_v43 = vsel %vm276_vm0, %v1035_v42, 0  ;;  %v1037_v44 = vld [vmem:[%s1412_s1 + $0x8] sm:$0xff]  }
  0x26   :  { %133 = vperm.xlu1 %1019, %v95_v27  }
  0x27   :  { %118 = vperm.xlu0 %1018, %v92_v29  }
  0x2a   :  { %123 = vperm.xlu1 %1019, %v93_v30  }
  0x2b   :  { %108 = vperm.xlu0 %1018, %v90_v33  }
  0x2c   :  { %993 = vmatpush3.bf16.xpose.msra.mxu0 %v296_v31 }
  0x2d   :  { %1012 = vmatprep.subr.msk.bf16.mxu0 %vm276_vm0, %v1032_v32 }
  0x2e   :  { %113 = vperm.xlu1 %1019, %v91_v34  }
  0x2f   :  { %98 = vperm.xlu0 %1018, %v88_v36  }
  0x32   :  { %103 = vperm.xlu1 %1019, %v89_v37  }
  0x33   :  { %857 = vperm.xlu0 %1018, %v86_v40  }
  0x34   :  { %995 = vmatpush3.bf16.xpose.msra.mxu0 %v293_v38 }
  0x35   :  { %1013 = vmatprep.subr.msk.bf16.mxu0 %vm276_vm0, %v1034_v39 }
  0x36   :  { %862 = vperm.xlu1 %1019, %v87_v41  }
  0x3c   :  { %997 = vmatpush3.bf16.xpose.msra.mxu0 %v290_v43 }
  0x43   :  { %999 = vmatmul.mubr.msk.bf16.vlgmr.msra.gmra.mxu0 %vm276_vm0, %v1140_v9 }
  0x44   :  { %1000 = vmatprep.mubr.msk.bf16.mxu0 %vm276_vm0, %v1037_v44 }
  0x4b   :  { %1001 = vmatmul.mubr.msk.bf16.gmra.mxu0 %vm276_vm0, %v1037_v44 }
  0x4c   :  { %1002 = vmatprep.mubr.msk.bf16.mxu0 %vm276_vm0, %v1038_v45 }
  0x53   :  { %1003 = vmatmul.mubr.msk.bf16.gmra.mxu0 %vm276_vm0, %v1038_v45 }
  0x54   :  { %1004 = vmatprep.mubr.msk.bf16.mxu0 %vm276_vm0, %v1039_v46 }
  0x5b   :  { %1005 = vmatmul.mubr.msk.bf16.gmra.mxu0 %vm276_vm0, %v1039_v46 }
  0x5c   :  { %790 = vmatprep.mubr.bf16.mxu0 %v1067_v3 }
  0x80   :  { %v169_v58 = vpop.permute.xlu0 %168 }
  0x81   :  { %v159_v56 = vpop.permute.xlu1 %158 }
  0x84   :  { %v174_v63 = vpop.permute.xlu0 %173 }
  0x85   :  { %v164_v61 = vpop.permute.xlu1 %163 }
  0x88   :  { %v149_v11 = vpop.permute.xlu0 %148 }
  0x99   :  { %v154_v6 = vpop.permute.xlu1 %153 }
  0x9a   :  { %v139_v30 = vpop.permute.xlu0 %138 }
  0x9d   :  { %v144_v23 = vpop.permute.xlu1 %143 }
 0x103   :  { %v371_v47 = vpop.f32.mrf.mxu0 }
 0x104   :  { %v372_v40 = vadd.f32 %v371_v47, %v139_v30  ;;  %v1268_v47 = vld [vmem:[%s1414_s3 + $0x8] sm:$0xff]  }
 0x105   :  { %v373_v48 = vpop.f32.mrf.mxu0 }
 0x106   :  { %v374_v33 = vadd.f32 %v373_v48, %v139_v30  ;;  %v410_v46 = vmax.f32 %v372_v40, 0.0  ;;  %v1260_v48 = vld [vmem:[%s1414_s3] sm:$0xff]  }
 0x107   :  { %v375_v49 = vpop.f32.mrf.mxu0 }
 0x108   :  { %v376_v35 = vadd.f32 %v375_v49, %v144_v23  ;;  %v411_v42 = vmax.f32 %v374_v33, 0.0  ;;  %v1276_v49 = vld [vmem:[%s1414_s3 + $0x10] sm:$0xff]  }
 0x109   :  { %v377_v50 = vpop.f32.mrf.mxu0 }
 0x10a   :  { %v378_v27 = vadd.f32 %v377_v50, %v144_v23  ;;  %v412_v43 = vmax.f32 %v376_v35, 0.0 }
 0x10b   :  { %v381_v51 = vpop.f32.mrf.mxu0 }
 0x10c   :  { %v382_v31 = vadd.f32 %v381_v51, %v149_v11  ;;  %v413_v38 = vmax.f32 %v378_v27, 0.0  ;;  %v426_v50 = vpack.c.bf16 %v412_v43, %v410_v46  ;;  %v1284_v51 = vld [vmem:[%s1414_s3 + $0x18] sm:$0xff]  }
 0x10d   :  { %v383_v52 = vpop.f32.mrf.mxu0 }
 0x10e   :  { %v384_v20 = vadd.f32 %v383_v52, %v149_v11  ;;  %v414_v41 = vmax.f32 %v382_v31, 0.0  ;;  %v427_v45 = vpack.c.bf16 %v413_v38, %v411_v42 }
 0x10f   :  { %v385_v53 = vpop.f32.mrf.mxu0 }
 0x110   :  { %v386_v24 = vadd.f32 %v385_v53, %v154_v6  ;;  %v415_v34 = vmax.f32 %v384_v20, 0.0 }
 0x111   :  { %v387_v54 = vpop.f32.mrf.mxu0 }
 0x112   :  { %v388_v14 = vadd.f32 %v387_v54, %v154_v6  ;;  %v416_v36 = vmax.f32 %v386_v24, 0.0 }
 0x113   :  { %v391_v55 = vpop.f32.mrf.mxu0 }
 0x114   :  { %v392_v18 = vadd.f32 %v391_v55, %v159_v56  ;;  %v417_v28 = vmax.f32 %v388_v14, 0.0  ;;  %v428_v44 = vpack.c.bf16 %v416_v36, %v414_v41 }
 0x115   :  { %v393_v57 = vpop.f32.mrf.mxu0 }
 0x116   :  { %v394_v9 = vadd.f32 %v393_v57, %v159_v56  ;;  %v418_v32 = vmax.f32 %v392_v18, 0.0  ;;  %v429_v39 = vpack.c.bf16 %v417_v28, %v415_v34 }
 0x117   :  { %v395_v59 = vpop.f32.mrf.mxu0 }
 0x118   :  { %v396_v12 = vadd.f32 %v395_v59, %v164_v61  ;;  %v419_v21 = vmax.f32 %v394_v9, 0.0 }
 0x119   :  { %v397_v60 = vpop.f32.mrf.mxu0 }
 0x11a   :  { %v398_v2 = vadd.f32 %v397_v60, %v164_v61  ;;  %v420_v25 = vmax.f32 %v396_v12, 0.0  ;;  %v1289_v61 = vpop.permute.xlu1 %133 }
 0x11b   :  { %v401_v62 = vpop.f32.mrf.mxu0 }
 0x11c   :  { %v402_v7 = vadd.f32 %v401_v62, %v169_v58  ;;  %v421_v15 = vmax.f32 %v398_v2, 0.0  ;;  %v430_v37 = vpack.c.bf16 %v420_v25, %v418_v32 }
 0x11d   :  { %v403_v0 = vpop.f32.mrf.mxu0 }
 0x11e   :  { %v404_v4 = vadd.f32 %v403_v0, %v169_v58  ;;  %v422_v19 = vmax.f32 %v402_v7, 0.0  ;;  %v431_v29 = vpack.c.bf16 %v421_v15, %v419_v21  ;;  %v1293_v2 = vpop.permute.xlu1 %123 }
 0x11f   :  { %v405_v1 = vpop.f32.mrf.mxu0 }
 0x120   :  { %v406_v5 = vadd.f32 %v405_v1, %v174_v63  ;;  %v423_v16 = vmax.f32 %v404_v4, 0.0 }
 0x121   :  { %v407_v8 = vpop.f32.mrf.mxu0 }
 0x122   :  { %v408_v10 = vadd.f32 %v407_v8, %v174_v63  ;;  %v424_v13 = vmax.f32 %v406_v5, 0.0  ;;  %v1291_v63 = vpop.permute.xlu0 %128  ;;  %v1300_v11 = vpop.permute.xlu1 %113 }
 0x124   :  { %v425_v17 = vmax.f32 %v408_v10, 0.0  ;;  %v432_v26 = vpack.c.bf16 %v424_v13, %v422_v19 }
 0x126   :  { %v433_v22 = vpack.c.bf16 %v425_v17, %v423_v16  ;;  %v1295_v5 = vpop.permute.xlu0 %118  ;;  %v1311_v28 = vpop.permute.xlu1 %103 }
 0x128   :  { %475 = vmatprep.subr.bf16.mxu1 %v433_v22 }
 0x129   :  { %476 = vmatpush1.bf16.msra.mxu1 %v432_v26 }
 0x12a   :  { %477 = vmatprep.subr.bf16.mxu1 %v431_v29  ;;  %v1305_v16 = vpop.permute.xlu0 %108 }
 0x12d   :  { %478 = vmatpush1.bf16.msra.mxu1 %v430_v37 }
 0x12e   :  { %479 = vmatprep.subr.bf16.mxu1 %v429_v39  ;;  %v1315_v35 = vpop.permute.xlu0 %98 }
 0x131   :  { %480 = vmatpush1.bf16.msra.mxu1 %v428_v44 }
 0x132   :  { %481 = vmatprep.subr.bf16.mxu1 %v427_v45 }
 0x135   :  { %482 = vmatpush1.bf16.msra.mxu1 %v426_v50 }
 0x138   :  { %964 = vmatmul.mubr.msk.bf16.vlgmr.msra.gmra.mxu1 %vm454_vm1, %v1260_v48 }
 0x139   :  { %509 = vmatprep.mubr.bf16.mxu1 %v1067_v3 }
 0x140   :  { %965 = vmatmul.mubr.msk.bf16.gmra.mxu1 %vm454_vm1, %v1268_v47 }
 0x141   :  { %519 = vmatprep.mubr.bf16.mxu1 %v1067_v3 }
 0x148   :  { %966 = vmatmul.mubr.msk.bf16.gmra.mxu1 %vm454_vm1, %v1276_v49 }
 0x149   :  { %529 = vmatprep.mubr.bf16.mxu1 %v1067_v3 }
 0x150   :  { %967 = vmatmul.mubr.msk.bf16.gmra.mxu1 %vm454_vm1, %v1284_v51 }
 0x151   :  { %596 = vmatprep.mubr.bf16.mxu1 %v1067_v3 }
 0x1f8   :  { %v501_v52 = vpop.f32.mrf.mxu1 }
 0x1f9   :  { %v502_v45 = vadd.f32 %v501_v52, %v1315_v35 }
 0x1fa   :  { %v503_v53 = vpop.f32.mrf.mxu1 }
 0x1fb   :  { %v504_v38 = vadd.f32 %v503_v53, %v1315_v35 }
 0x1fc   :  { %v505_v54 = vpop.f32.mrf.mxu1 }
 0x1fd   :  { %v506_v40 = vadd.f32 %v505_v54, %v1311_v28  ;;  %v541_v50 = vmax.f32 %v504_v38, 0.0 }
 0x1fe   :  { %v507_v55 = vpop.f32.mrf.mxu1 }
 0x1ff   :  { %v508_v32 = vadd.f32 %v507_v55, %v1311_v28  ;;  %v542_v55 = vmax.f32 %v506_v40, 0.0 }
 0x200   :  { %v511_v56 = vpop.f32.mrf.mxu1 }
 0x201   :  { %v512_v36 = vadd.f32 %v511_v56, %v1305_v16  ;;  %v543_v43 = vmax.f32 %v508_v32, 0.0 }
 0x202   :  { %v513_v57 = vpop.f32.mrf.mxu1 }
 0x203   :  { %v514_v25 = vadd.f32 %v513_v57, %v1305_v16  ;;  %v544_v46 = vmax.f32 %v512_v36, 0.0  ;;  %v557_v57 = vpack.c.bf16 %v543_v43, %v541_v50 }
 0x204   :  { %v515_v58 = vpop.f32.mrf.mxu1 }
 0x205   :  { %v516_v29 = vadd.f32 %v515_v58, %v1300_v11  ;;  %v545_v39 = vmax.f32 %v514_v25, 0.0  ;;  %v540_v58 = vmax.f32 %v502_v45, 0.0 }
 0x206   :  { %v517_v59 = vpop.f32.mrf.mxu1 }
 0x207   :  { %v518_v19 = vadd.f32 %v517_v59, %v1300_v11  ;;  %v546_v41 = vmax.f32 %v516_v29, 0.0  ;;  %v556_v53 = vpack.c.bf16 %v542_v55, %v540_v58 }
 0x208   :  { %v521_v60 = vpop.f32.mrf.mxu1 }
 0x209   :  { %v522_v23 = vadd.f32 %v521_v60, %v1295_v5  ;;  %v547_v33 = vmax.f32 %v518_v19, 0.0  ;;  %v558_v56 = vpack.c.bf16 %v546_v41, %v544_v46 }
 0x20a   :  { %v523_v62 = vpop.f32.mrf.mxu1 }
 0x20b   :  { %v524_v14 = vadd.f32 %v523_v62, %v1295_v5  ;;  %v548_v37 = vmax.f32 %v522_v23, 0.0  ;;  %v559_v44 = vpack.c.bf16 %v547_v33, %v545_v39 }
 0x20c   :  { %v525_v0 = vpop.f32.mrf.mxu1 }
 0x20d   :  { %v526_v17 = vadd.f32 %v525_v0, %v1293_v2  ;;  %v549_v26 = vmax.f32 %v524_v14, 0.0 }
 0x20e   :  { %v527_v1 = vpop.f32.mrf.mxu1 }
 0x20f   :  { %v528_v8 = vadd.f32 %v527_v1, %v1293_v2  ;;  %v550_v30 = vmax.f32 %v526_v17, 0.0 }
 0x210   :  { %v531_v4 = vpop.f32.mrf.mxu1 }
 0x211   :  { %v532_v12 = vadd.f32 %v531_v4, %v1291_v63  ;;  %v551_v20 = vmax.f32 %v528_v8, 0.0  ;;  %v560_v42 = vpack.c.bf16 %v550_v30, %v548_v37 }
 0x212   :  { %v533_v6 = vpop.f32.mrf.mxu1 }
 0x213   :  { %v534_v9 = vadd.f32 %v533_v6, %v1291_v63  ;;  %v552_v24 = vmax.f32 %v532_v12, 0.0  ;;  %v561_v34 = vpack.c.bf16 %v551_v20, %v549_v26 }
 0x214   :  { %v535_v7 = vpop.f32.mrf.mxu1 }
 0x215   :  { %v536_v10 = vadd.f32 %v535_v7, %v1289_v61  ;;  %v553_v21 = vmax.f32 %v534_v9, 0.0 }
 0x216   :  { %v537_v13 = vpop.f32.mrf.mxu1 }
 0x217   :  { %v538_v15 = vadd.f32 %v537_v13, %v1289_v61  ;;  %v554_v18 = vmax.f32 %v536_v10, 0.0 }
 0x219   :  { %v555_v22 = vmax.f32 %v538_v15, 0.0  ;;  %v562_v31 = vpack.c.bf16 %v554_v18, %v552_v24 }
 0x21b   :  { %v563_v27 = vpack.c.bf16 %v555_v22, %v553_v21 }
 0x21d   :  { %572 = vmatprep.subr.bf16.mxu1 %v563_v27 }
 0x21e   :  { %573 = vmatpush1.bf16.msra.mxu1 %v562_v31 }
 0x21f   :  { %574 = vmatprep.subr.bf16.mxu1 %v561_v34 }
 0x222   :  { %575 = vmatpush1.bf16.msra.mxu1 %v560_v42 }
 0x223   :  { %576 = vmatprep.subr.bf16.mxu1 %v559_v44 }
 0x226   :  { %577 = vmatpush1.bf16.msra.mxu1 %v558_v56 }
 0x227   :  { %578 = vmatprep.subr.bf16.mxu1 %v557_v57 }
 0x22a   :  { %579 = vmatpush1.bf16.msra.mxu1 %v556_v53 }
 0x22d   :  { %968 = vmatmul.mubr.msk.bf16.vlgmr.msra.gmra.mxu1 %vm454_vm1, %v1260_v48 }
 0x22e   :  { %606 = vmatprep.mubr.bf16.mxu1 %v1067_v3 }
 0x235   :  { %969 = vmatmul.mubr.msk.bf16.gmra.mxu1 %vm454_vm1, %v1268_v47 }
 0x236   :  { %616 = vmatprep.mubr.bf16.mxu1 %v1067_v3 }
 0x23d   :  { %970 = vmatmul.mubr.msk.bf16.gmra.mxu1 %vm454_vm1, %v1276_v49 }
 0x23e   :  { %626 = vmatprep.mubr.bf16.mxu1 %v1067_v3 }
 0x245   :  { %971 = vmatmul.mubr.msk.bf16.gmra.mxu1 %vm454_vm1, %v1284_v51 }
 0x246   :  { %693 = vmatprep.mubr.bf16.mxu1 %v1067_v3 }
 0x2ed   :  { %v598_v52 = vpop.f32.mrf.mxu1 }
 0x2ee   :  { %v599_v57 = vadd.f32 %v598_v52, %v1315_v35 }
 0x2ef   :  { %v600_v54 = vpop.f32.mrf.mxu1 }
 0x2f0   :  { %v601_v43 = vadd.f32 %v600_v54, %v1315_v35 }
 0x2f1   :  { %v602_v59 = vpop.f32.mrf.mxu1 }
 0x2f2   :  { %v603_v45 = vadd.f32 %v602_v59, %v1311_v28  ;;  %v638_v53 = vmax.f32 %v601_v43, 0.0 }
 0x2f3   :  { %v604_v60 = vpop.f32.mrf.mxu1 }
 0x2f4   :  { %v605_v38 = vadd.f32 %v604_v60, %v1311_v28  ;;  %v639_v60 = vmax.f32 %v603_v45, 0.0 }
 0x2f5   :  { %v608_v62 = vpop.f32.mrf.mxu1 }
 0x2f6   :  { %v609_v41 = vadd.f32 %v608_v62, %v1305_v16  ;;  %v640_v55 = vmax.f32 %v605_v38, 0.0 }
 0x2f7   :  { %v610_v0 = vpop.f32.mrf.mxu1 }
 0x2f8   :  { %v611_v31 = vadd.f32 %v610_v0, %v1305_v16  ;;  %v641_v58 = vmax.f32 %v609_v41, 0.0  ;;  %v654_v0 = vpack.c.bf16 %v640_v55, %v638_v53 }
 0x2f9   :  { %v612_v1 = vpop.f32.mrf.mxu1 }
 0x2fa   :  { %v613_v34 = vadd.f32 %v612_v1, %v1300_v11  ;;  %v642_v44 = vmax.f32 %v611_v31, 0.0  ;;  %v637_v1 = vmax.f32 %v599_v57, 0.0 }
 0x2fb   :  { %v614_v4 = vpop.f32.mrf.mxu1 }
 0x2fc   :  { %v615_v24 = vadd.f32 %v614_v4, %v1300_v11  ;;  %v643_v46 = vmax.f32 %v613_v34, 0.0  ;;  %v653_v54 = vpack.c.bf16 %v639_v60, %v637_v1 }
 0x2fd   :  { %v618_v6 = vpop.f32.mrf.mxu1 }
 0x2fe   :  { %v619_v29 = vadd.f32 %v618_v6, %v1295_v5  ;;  %v644_v39 = vmax.f32 %v615_v24, 0.0  ;;  %v655_v62 = vpack.c.bf16 %v643_v46, %v641_v58 }
 0x2ff   :  { %v620_v7 = vpop.f32.mrf.mxu1 }
 0x300   :  { %v621_v20 = vadd.f32 %v620_v7, %v1295_v5  ;;  %v645_v42 = vmax.f32 %v619_v29, 0.0  ;;  %v656_v56 = vpack.c.bf16 %v644_v39, %v642_v44 }
 0x301   :  { %v622_v8 = vpop.f32.mrf.mxu1 }
 0x302   :  { %v623_v22 = vadd.f32 %v622_v8, %v1293_v2  ;;  %v646_v32 = vmax.f32 %v621_v20, 0.0 }
 0x303   :  { %v624_v9 = vpop.f32.mrf.mxu1 }
 0x304   :  { %v625_v14 = vadd.f32 %v624_v9, %v1293_v2  ;;  %v647_v36 = vmax.f32 %v623_v22, 0.0 }
 0x305   :  { %v628_v10 = vpop.f32.mrf.mxu1 }
 0x306   :  { %v629_v18 = vadd.f32 %v628_v10, %v1291_v63  ;;  %v648_v25 = vmax.f32 %v625_v14, 0.0  ;;  %v657_v50 = vpack.c.bf16 %v647_v36, %v645_v42 }
 0x307   :  { %v630_v12 = vpop.f32.mrf.mxu1 }
 0x308   :  { %v631_v15 = vadd.f32 %v630_v12, %v1291_v63  ;;  %v649_v30 = vmax.f32 %v629_v18, 0.0  ;;  %v658_v40 = vpack.c.bf16 %v648_v25, %v646_v32 }
 0x309   :  { %v632_v13 = vpop.f32.mrf.mxu1 }
 0x30a   :  { %v633_v17 = vadd.f32 %v632_v13, %v1289_v61  ;;  %v650_v26 = vmax.f32 %v631_v15, 0.0 }
 0x30b   :  { %v634_v19 = vpop.f32.mrf.mxu1 }
 0x30c   :  { %v635_v21 = vadd.f32 %v634_v19, %v1289_v61  ;;  %v651_v23 = vmax.f32 %v633_v17, 0.0 }
 0x30e   :  { %v652_v27 = vmax.f32 %v635_v21, 0.0  ;;  %v659_v37 = vpack.c.bf16 %v651_v23, %v649_v30 }
 0x310   :  { %v660_v33 = vpack.c.bf16 %v652_v27, %v650_v26 }
 0x312   :  { %669 = vmatprep.subr.bf16.mxu1 %v660_v33 }
 0x313   :  { %670 = vmatpush1.bf16.msra.mxu1 %v659_v37 }
 0x314   :  { %671 = vmatprep.subr.bf16.mxu1 %v658_v40 }
 0x317   :  { %672 = vmatpush1.bf16.msra.mxu1 %v657_v50 }
 0x318   :  { %673 = vmatprep.subr.bf16.mxu1 %v656_v56 }
 0x31b   :  { %674 = vmatpush1.bf16.msra.mxu1 %v655_v62 }
 0x31c   :  { %675 = vmatprep.subr.bf16.mxu1 %v654_v0 }
 0x31f   :  { %676 = vmatpush1.bf16.msra.mxu1 %v653_v54 }
 0x322   :  { %972 = vmatmul.mubr.msk.bf16.vlgmr.msra.gmra.mxu1 %vm454_vm1, %v1260_v48 }
 0x323   :  { %703 = vmatprep.mubr.bf16.mxu1 %v1067_v3 }
 0x32a   :  { %973 = vmatmul.mubr.msk.bf16.gmra.mxu1 %vm454_vm1, %v1268_v47 }
 0x32b   :  { %713 = vmatprep.mubr.bf16.mxu1 %v1067_v3 }
 0x332   :  { %974 = vmatmul.mubr.msk.bf16.gmra.mxu1 %vm454_vm1, %v1276_v49 }
 0x333   :  { %723 = vmatprep.mubr.bf16.mxu1 %v1067_v3 }
 0x33a   :  { %975 = vmatmul.mubr.msk.bf16.gmra.mxu1 %vm454_vm1, %v1284_v51 }
 0x33b   :  { %905 = vmatprep.mubr.bf16.mxu1 %v1067_v3 }
 0x3e2   :  { %v695_v52 = vpop.f32.mrf.mxu1 }
 0x3e3   :  { %v696_v0 = vadd.f32 %v695_v52, %v1315_v35 }
 0x3e4   :  { %v697_v59 = vpop.f32.mrf.mxu1 }
 0x3e5   :  { %v698_v55 = vadd.f32 %v697_v59, %v1315_v35 }
 0x3e6   :  { %v699_v4 = vpop.f32.mrf.mxu1 }
 0x3e7   :  { %v700_v57 = vadd.f32 %v699_v4, %v1311_v28  ;;  %v735_v54 = vmax.f32 %v698_v55, 0.0 }
 0x3e8   :  { %v701_v6 = vpop.f32.mrf.mxu1 }
 0x3e9   :  { %v702_v43 = vadd.f32 %v701_v6, %v1311_v28  ;;  %v736_v6 = vmax.f32 %v700_v57, 0.0 }
 0x3ea   :  { %v705_v7 = vpop.f32.mrf.mxu1 }
 0x3eb   :  { %v706_v46 = vadd.f32 %v705_v7, %v1305_v16  ;;  %v737_v60 = vmax.f32 %v702_v43, 0.0 }
 0x3ec   :  { %v707_v8 = vpop.f32.mrf.mxu1 }
 0x3ed   :  { %v708_v37 = vadd.f32 %v707_v8, %v1305_v16  ;;  %v738_v1 = vmax.f32 %v706_v46, 0.0  ;;  %v751_v8 = vpack.c.bf16 %v737_v60, %v735_v54  ;;  %v858_v54 = vpop.permute.xlu0 %857 }
 0x3ee   :  { %v709_v9 = vpop.f32.mrf.mxu1 }
 0x3ef   :  { %v710_v40 = vadd.f32 %v709_v9, %v1300_v11  ;;  %v739_v56 = vmax.f32 %v708_v37, 0.0  ;;  %v734_v9 = vmax.f32 %v696_v0, 0.0 }
 0x3f0   :  { %v711_v10 = vpop.f32.mrf.mxu1 }
 0x3f1   :  { %v712_v30 = vadd.f32 %v711_v10, %v1300_v11  ;;  %v740_v58 = vmax.f32 %v710_v40, 0.0  ;;  %v750_v59 = vpack.c.bf16 %v736_v6, %v734_v9  ;;  %v863_v9 = vpop.permute.xlu1 %862 }
 0x3f2   :  { %v715_v12 = vpop.f32.mrf.mxu1 }
 0x3f3   :  { %v716_v34 = vadd.f32 %v715_v12, %v1295_v5  ;;  %v741_v44 = vmax.f32 %v712_v30, 0.0  ;;  %v752_v7 = vpack.c.bf16 %v740_v58, %v738_v1 }
 0x3f4   :  { %v717_v13 = vpop.f32.mrf.mxu1 }
 0x3f5   :  { %v718_v25 = vadd.f32 %v717_v13, %v1295_v5  ;;  %v742_v50 = vmax.f32 %v716_v34, 0.0  ;;  %v753_v62 = vpack.c.bf16 %v741_v44, %v739_v56 }
 0x3f6   :  { %v719_v14 = vpop.f32.mrf.mxu1 }
 0x3f7   :  { %v720_v27 = vadd.f32 %v719_v14, %v1293_v2  ;;  %v743_v38 = vmax.f32 %v718_v25, 0.0 }
 0x3f8   :  { %v721_v15 = vpop.f32.mrf.mxu1 }
 0x3f9   :  { %v722_v20 = vadd.f32 %v721_v15, %v1293_v2  ;;  %v744_v41 = vmax.f32 %v720_v27, 0.0 }
 0x3fa   :  { %v725_v17 = vpop.f32.mrf.mxu1 }
 0x3fb   :  { %v726_v23 = vadd.f32 %v725_v17, %v1291_v63  ;;  %v745_v31 = vmax.f32 %v722_v20, 0.0  ;;  %v754_v53 = vpack.c.bf16 %v744_v41, %v742_v50 }
 0x3fc   :  { %v727_v18 = vpop.f32.mrf.mxu1 }
 0x3fd   :  { %v728_v21 = vadd.f32 %v727_v18, %v1291_v63  ;;  %v746_v36 = vmax.f32 %v726_v23, 0.0  ;;  %v755_v45 = vpack.c.bf16 %v745_v31, %v743_v38 }
 0x3fe   :  { %v729_v19 = vpop.f32.mrf.mxu1 }
 0x3ff   :  { %v730_v22 = vadd.f32 %v729_v19, %v1289_v61  ;;  %v747_v32 = vmax.f32 %v728_v21, 0.0 }
 0x400   :  { %v731_v24 = vpop.f32.mrf.mxu1 }
 0x401   :  { %v732_v26 = vadd.f32 %v731_v24, %v1289_v61  ;;  %v748_v29 = vmax.f32 %v730_v22, 0.0 }
 0x403   :  { %v749_v33 = vmax.f32 %v732_v26, 0.0  ;;  %v756_v42 = vpack.c.bf16 %v748_v29, %v746_v36 }
 0x405   :  { %v757_v39 = vpack.c.bf16 %v749_v33, %v747_v32 }
 0x407   :  { %766 = vmatprep.subr.bf16.mxu0 %v757_v39 }
 0x408   :  { %767 = vmatpush1.bf16.msra.mxu0 %v756_v42 }
 0x409   :  { %768 = vmatprep.subr.bf16.mxu0 %v755_v45 }
 0x40c   :  { %769 = vmatpush1.bf16.msra.mxu0 %v754_v53 }
 0x40d   :  { %770 = vmatprep.subr.bf16.mxu0 %v753_v62 }
 0x410   :  { %771 = vmatpush1.bf16.msra.mxu0 %v752_v7 }
 0x411   :  { %772 = vmatprep.subr.bf16.mxu0 %v751_v8 }
 0x414   :  { %773 = vmatpush1.bf16.msra.mxu0 %v750_v59 }
 0x417   :  { %976 = vmatmul.mubr.msk.bf16.vlgmr.msra.gmra.mxu0 %vm454_vm1, %v1260_v48 }
 0x418   :  { %800 = vmatprep.mubr.bf16.mxu0 %v1067_v3 }
 0x41f   :  { %977 = vmatmul.mubr.msk.bf16.gmra.mxu0 %vm454_vm1, %v1268_v47 }
 0x420   :  { %810 = vmatprep.mubr.bf16.mxu0 %v1067_v3 }
 0x427   :  { %978 = vmatmul.mubr.msk.bf16.gmra.mxu0 %vm454_vm1, %v1276_v49 }
 0x428   :  { %820 = vmatprep.mubr.bf16.mxu0 %v1067_v3 }
 0x42f   :  { %979 = vmatmul.mubr.msk.bf16.gmra.mxu0 %vm454_vm1, %v1284_v51 }
 0x4d7   :  { %v792_v52 = vpop.f32.mrf.mxu0 }
 0x4d8   :  { %v793_v57 = vadd.f32 %v792_v52, %v1315_v35 }
 0x4d9   :  { %v794_v4 = vpop.f32.mrf.mxu0 }
 0x4da   :  { %v831_v0 = vmax.f32 %v793_v57, 0.0 }
 0x4db   :  { %v796_v10 = vpop.f32.mrf.mxu0 }
 0x4dc   :  { %v797_v46 = vadd.f32 %v796_v10, %v1311_v28 }
 0x4dd   :  { %v798_v12 = vpop.f32.mrf.mxu0 }
 0x4de   :  { %v833_v60 = vmax.f32 %v797_v46, 0.0 }
 0x4df   :  { %v802_v48 = vpop.f32.mrf.mxu0 }
 0x4e0   :  { %v803_v43 = vadd.f32 %v802_v48, %v1305_v16  ;;  %v847_v1 = vpack.c.bf16 %v833_v60, %v831_v0 }
 0x4e1   :  { %v804_v13 = vpop.f32.mrf.mxu0 }
 0x4e2   :  { %v805_v37 = vadd.f32 %v804_v13, %v1305_v16  ;;  %v835_v58 = vmax.f32 %v803_v43, 0.0 }
 0x4e3   :  { %v806_v14 = vpop.f32.mrf.mxu0 }
 0x4e4   :  { %v807_v39 = vadd.f32 %v806_v14, %v1300_v11  ;;  %v836_v45 = vmax.f32 %v805_v37, 0.0 }
 0x4e5   :  { %v808_v15 = vpop.f32.mrf.mxu0 }
 0x4e6   :  { %v809_v30 = vadd.f32 %v808_v15, %v1300_v11  ;;  %v837_v50 = vmax.f32 %v807_v39, 0.0 }
 0x4e7   :  { %v812_v17 = vpop.f32.mrf.mxu0 }
 0x4e8   :  { %v813_v34 = vadd.f32 %v812_v17, %v1295_v5  ;;  %v849_v16 = vpack.c.bf16 %v837_v50, %v835_v58 }
 0x4e9   :  { %v814_v47 = vpop.f32.mrf.mxu0 }
 0x4ea   :  { %v815_v25 = vadd.f32 %v814_v47, %v1295_v5  ;;  %v839_v44 = vmax.f32 %v813_v34, 0.0  ;;  %v795_v5 = vadd.f32 %v794_v4, %v1315_v35 }
 0x4eb   :  { %v816_v18 = vpop.f32.mrf.mxu0 }
 0x4ec   :  { %v817_v27 = vadd.f32 %v816_v18, %v1293_v2  ;;  %v840_v38 = vmax.f32 %v815_v25, 0.0  ;;  %v832_v53 = vmax.f32 %v795_v5, 0.0 }
 0x4ed   :  { %v818_v19 = vpop.f32.mrf.mxu0 }
 0x4ee   :  { %v819_v3 = vadd.f32 %v818_v19, %v1293_v2  ;;  %v841_v40 = vmax.f32 %v817_v27, 0.0  ;;  %v838_v2 = vmax.f32 %v809_v30, 0.0 }
 0x4ef   :  { %v822_v20 = vpop.f32.mrf.mxu0 }
 0x4f0   :  { %v823_v23 = vadd.f32 %v822_v20, %v1291_v63  ;;  %v842_v31 = vmax.f32 %v819_v3, 0.0  ;;  %v851_v55 = vpack.c.bf16 %v841_v40, %v839_v44  ;;  %v850_v56 = vpack.c.bf16 %v838_v2, %v836_v45 }
 0x4f1   :  { %v824_v21 = vpop.f32.mrf.mxu0 }
 0x4f2   :  { %v825_v22 = vadd.f32 %v824_v21, %v1291_v63  ;;  %v843_v36 = vmax.f32 %v823_v23, 0.0  ;;  %v852_v42 = vpack.c.bf16 %v842_v31, %v840_v38 }
 0x4f3   :  { %v826_v49 = vpop.f32.mrf.mxu0 }
 0x4f4   :  { %v827_v51 = vadd.f32 %v826_v49, %v1289_v61  ;;  %v844_v32 = vmax.f32 %v825_v22, 0.0 }
 0x4f5   :  { %v828_v24 = vpop.f32.mrf.mxu0 }
 0x4f6   :  { %v829_v26 = vadd.f32 %v828_v24, %v1289_v61  ;;  %v845_v29 = vmax.f32 %v827_v51, 0.0  ;;  %v799_v61 = vadd.f32 %v798_v12, %v1311_v28  ;;  %v1044_v28 = vld [vmem:[%s1416_s5] sm:$0x1f]   ;;  %s1045_s5 = scalar_lea.vmem %s926_s12, 512 }
 0x4f7   :  { %p1046_p0 = scmp.ne.s32.totalorder %s926_s12, %s1045_s5  ;;  %p1051_p2 = scmp.lt.s32.totalorder %s1045_s5, %s1045_s5 }
 0x4f8   :  { %v846_v33 = vmax.f32 %v829_v26, 0.0  ;;  %v853_v41 = vpack.c.bf16 %v845_v29, %v843_v36  ;;  %v834_v11 = vmax.f32 %v799_v61, 0.0 }
 0x4f9   :  { %p1052_p3 = por %p1051_p2, %p1050_p1 }
 0x4fa   :  { %v854_v63 = vpack.c.bf16 %v846_v33, %v844_v32  ;;  %v848_v62 = vpack.c.bf16 %v834_v11, %v832_v53 }
 0x4fb   :  { %p1053_p4 = pnand %p1052_p3, %p1046_p0 }
 0x4fc   :  { %881 = vmatprep.subr.bf16.mxu1 %v854_v63 }
 0x4fd   :  { %882 = vmatpush1.bf16.msra.mxu1 %v853_v41 }
 0x4fe   :  { %883 = vmatprep.subr.bf16.mxu1 %v852_v42 }
 0x501   :  { %884 = vmatpush1.bf16.msra.mxu1 %v851_v55 }
 0x502   :  { %885 = vmatprep.subr.bf16.mxu1 %v850_v56 }
 0x505   :  { %886 = vmatpush1.bf16.msra.mxu1 %v849_v16 }
 0x506   :  { %887 = vmatprep.subr.bf16.mxu1 %v848_v62 }
 0x509   :  { %888 = vmatpush1.bf16.msra.mxu1 %v847_v1 }
 0x50c   :  { %981 = vmatmul.mubr.msk.bf16.vlgmr.msra.gmra.mxu1 %vm454_vm1, %v1044_v28 }
 0x5cc   :  { %v907_v35 = vpop.f32.mrf.mxu1 }
 0x5cd   :  { %v908_v6 = vadd.f32 %v907_v35, %v858_v54 }
 0x5ce   :  { %v909_v7 = vpop.f32.mrf.mxu1 }
 0x5cf   :  { %916 = vst [vmem:[#allocation2] sm:$0xff] %v908_v6  ;;  %v910_v8 = vadd.f32 %v909_v7, %v858_v54 }
 0x5d0   :  { %v911_v59 = vpop.f32.mrf.mxu1 }
 0x5d1   :  { %917 = vst [vmem:[#allocation2 + $0x8] sm:$0xff] %v910_v8  ;;  %v912_v52 = vadd.f32 %v911_v59, %v863_v9 }
 0x5d2   :  { %v913_v4 = vpop.f32.mrf.mxu1 }
 0x5d3   :  { %918 = vst [vmem:[#allocation2 + $0x10] sm:$0x3] %v912_v52  ;;  %v914_v10 = vadd.f32 %v913_v4, %v863_v9 }
 0x5d5   :  { %919 = vst [vmem:[#allocation2 + $0x18] sm:$0x3] %v914_v10 }
 0x5d6   :  { %1056 = shalt.err (!%p1053_p4)
}
 0x5d7   :  { %s1069_s13 = smov 256   ;;  %s1070_s14 = smov 16  }
 0x5d8   :  { %931 = dma.vmem_to_hbm [thread:$0]  %s926_s12, 512, %s1418_s7, [#allocation3], %s1069_s13, %s1069_s13, %s1070_s14  }
 0x5d9   :  { %1065 = dma.done.wait [#allocation3], 512  }
 0x5da   :  { %1066 = vsyncadd [#allocation3], 4294966784 }
 0x5db   :  { %935 = vsyncpa [#allocation3], 1 }

</bundles_post_ra>
